<compile_context>
chip_gen: v7x
topology: tpu7x:2x2x1
jax: 0.10.0
libtpu: 0.0.40
codegen_flags: <defaults>
</compile_context>

<pallas_src>
import math

import jax
import jax.numpy as jnp
from jax.experimental import pallas as pl
from jax.experimental.pallas import tpu as pltpu


NUM_CLASSES = 10


def _round_up(n, m):
    return ((n + m - 1) // m) * m


def _cdiv(a, b):
    return (a + b - 1) // b


def _spec(shape, index_map, buffers=None):
    """BlockSpec with optional multi-buffering; falls back cleanly if unsupported."""
    if buffers is not None and hasattr(pl, "Buffered"):
        try:
            return pl.BlockSpec(shape, index_map,
                                pipeline_mode=pl.Buffered(buffer_count=buffers))
        except TypeError:
            pass
    return pl.BlockSpec(shape, index_map)


def _mlp_kernel(x_ref,
                w0, b0, w1, b1, w2, b2, w3, b3, w4, b4, w5, b5, w6, b6,
                out_ref):
    h = x_ref[...]                         # bf16 (TB, image_size)

    def dense_sigmoid(h, w_ref, b_ref):
        # bf16 x bf16 MXU matmul, f32 accumulation, f32 bias.
        z = jnp.dot(h, w_ref[...], preferred_element_type=jnp.float32) + b_ref[...]
        # sigmoid(z) = 0.5*tanh(0.5*z)+0.5: one EUP push; mul/add land on the VPU.
        s = 0.5 * jnp.tanh(0.5 * z) + 0.5
        return s.astype(jnp.bfloat16)      # keep next matmul on the bf16 MXU path

    h = dense_sigmoid(h, w0, b0)           # image_size -> 128
    h = dense_sigmoid(h, w1, b1)           # 128 -> 64
    h = dense_sigmoid(h, w2, b2)           # 64  -> 10
    h = dense_sigmoid(h, w3, b3)           # 10  -> 10
    h = dense_sigmoid(h, w4, b4)           # 10  -> 10
    h = dense_sigmoid(h, w5, b5)           # 10  -> 10

    # Final linear + numerically stable log_softmax, all in f32, over the real
    # 10 classes (narrow output block -> 12.8x fewer writeback bytes than a
    # 128-lane f32 pad).
    z = jnp.dot(h, w6[...], preferred_element_type=jnp.float32) + b6[...]
    m = jnp.max(z, axis=-1, keepdims=True)
    shifted = z - m
    lse = jnp.log(jnp.sum(jnp.exp(shifted), axis=-1, keepdims=True))
    out_ref[...] = (shifted - lse).astype(out_ref.dtype)


def model_e_forward(x, params, *, batch_tile=512):
    """x: any shape flattening to (-1, image_size); params: list of (W[in,out], b[out])."""
    image_size = params[0][0].shape[0]
    # bf16 input: halves the dominant HBM read traffic; f32 accumulation inside.
    x2d = x.reshape(-1, image_size).astype(jnp.bfloat16)
    B = x2d.shape[0]

    # Batch tile: whole (8-rounded) batch if small; otherwise tile so the grid
    # has ~>=8 steps (v7x 2-TC balance) while keeping tiles >= 256 rows for
    # HBM-roofline efficiency, capped at batch_tile.
    TB = _round_up(max(B, 1), 8)
    if TB > batch_tile:
        TB = max(256, min(batch_tile, _round_up(_cdiv(B, 8), 8)))
    B_pad = _round_up(B, TB)
    if B_pad != B:
        x2d = jnp.pad(x2d, ((0, B_pad - B), (0, 0)))
    grid = (B_pad // TB,)

    # Deeper input buffering only pays off when there are several grid steps.
    x_buffers = 3 if grid[0] > 2 else None
    in_specs = [_spec((TB, image_size), lambda i: (i, 0), buffers=x_buffers)]

    # Weights in bf16 (native MXU path), biases in f32 (added to f32 accumulator).
    # Constant index_maps -> each operand is DMA'd to VMEM once and stays resident.
    flat_params = []
    for (w, b) in params:
        wb = w.astype(jnp.bfloat16)
        b2 = b.astype(jnp.float32).reshape(1, -1)
        flat_params.append(wb)
        flat_params.append(b2)
        in_specs.append(pl.BlockSpec(wb.shape, lambda i: (0, 0)))
        in_specs.append(pl.BlockSpec(b2.shape, lambda i: (0, 0)))

    # Advisory cost estimate (helps XLA scheduling around the call).
    dims = [image_size] + [w.shape[1] for (w, _) in params]
    flops = 2 * B_pad * sum(dims[i] * dims[i + 1] for i in range(len(dims) - 1))
    n_tanh = sum(dims[1:-1])                                   # 128+64+10+10+10+10
    transcendentals = B_pad * (n_tanh + NUM_CLASSES + 1)       # tanh per sigmoid, softmax exp+log
    weight_bytes = sum(int(p.size) * p.dtype.itemsize for p in flat_params)
    bytes_accessed = (B_pad * image_size * 2                   # bf16 input
                      + B_pad * NUM_CLASSES * 4                # f32 narrow output
                      + weight_bytes)

    out = pl.pallas_call(
        _mlp_kernel,
        out_shape=jax.ShapeDtypeStruct((B_pad, NUM_CLASSES), jnp.float32),
        grid=grid,
        in_specs=in_specs,
        out_specs=pl.BlockSpec((TB, NUM_CLASSES), lambda i: (i, 0)),
        compiler_params=pltpu.CompilerParams(
            dimension_semantics=("parallel",),
            vmem_limit_bytes=32 * 1024 * 1024),
        cost_estimate=pl.CostEstimate(
            flops=int(flops),
            transcendentals=int(transcendentals),
            bytes_accessed=int(bytes_accessed)),
    )(x2d, *flat_params)

    return out[:B]


def init_params(key, image_size):
    """Deterministic init matching nn.Linear shapes (stored as [in, out])."""
    dims = [image_size, 128, 64, 10, 10, 10, 10, 10]
    params = []
    for i in range(len(dims) - 1):
        fan_in, fan_out = dims[i], dims[i + 1]
        key, kw, kb = jax.random.split(key, 3)
        bound = 1.0 / math.sqrt(fan_in)
        w = jax.random.uniform(kw, (fan_in, fan_out), jnp.float32, -bound, bound)
        b = jax.random.uniform(kb, (fan_out,), jnp.float32, -bound, bound)
        params.append((w, b))
    return params


def _reference_forward(x, params):
    """Pure-JAX reference mimicking the kernel's bf16 rounding of x/weights/activations."""
    image_size = params[0][0].shape[0]
    bf = lambda a: a.astype(jnp.bfloat16).astype(jnp.float32)
    h = bf(x.reshape(-1, image_size))
    for (w, b) in params[:-1]:
        h = bf(jax.nn.sigmoid(h @ bf(w) + b))
    w, b = params[-1]
    return jax.nn.log_softmax(h @ bf(w) + b, axis=-1)


if __name__ == "__main__":
    IMAGE_SIZE = 64          # e.g. 8x8 single-channel images
    B = 2

    key = jax.random.PRNGKey(0)
    key, kx = jax.random.split(key)
    x = jax.random.normal(kx, (B, 1, 8, 8), jnp.float32)   # flattened to (B, 64) inside

    params = init_params(key, IMAGE_SIZE)

    out = model_e_forward(x, params)
    out = jax.block_until_ready(out)

    assert out.shape == (B, NUM_CLASSES)
    # log_softmax rows must exp-sum to ~1
    assert bool(jnp.allclose(jnp.sum(jnp.exp(out), axis=-1), 1.0, atol=1e-3))
    # match the bf16-rounded pure-JAX reference (EUP tanh approximation -> small slack)
    ref = _reference_forward(x, params)
    err = float(jnp.max(jnp.abs(out - ref)))
    assert err < 2e-2, err

    print("KERNEL_OK")
</pallas_src>

<mosaic_0001>
module attributes {stable_mosaic.version = 11 : i64} {
  func.func @_mlp_kernel(%arg0: i32, %arg1: memref<8x64xbf16, #tpu.memory_space<vmem>>, %arg2: memref<64x128xbf16, #tpu.memory_space<vmem>>, %arg3: memref<1x128xf32, #tpu.memory_space<vmem>>, %arg4: memref<128x64xbf16, #tpu.memory_space<vmem>>, %arg5: memref<1x64xf32, #tpu.memory_space<vmem>>, %arg6: memref<64x10xbf16, #tpu.memory_space<vmem>>, %arg7: memref<1x10xf32, #tpu.memory_space<vmem>>, %arg8: memref<10x10xbf16, #tpu.memory_space<vmem>>, %arg9: memref<1x10xf32, #tpu.memory_space<vmem>>, %arg10: memref<10x10xbf16, #tpu.memory_space<vmem>>, %arg11: memref<1x10xf32, #tpu.memory_space<vmem>>, %arg12: memref<10x10xbf16, #tpu.memory_space<vmem>>, %arg13: memref<1x10xf32, #tpu.memory_space<vmem>>, %arg14: memref<10x10xbf16, #tpu.memory_space<vmem>>, %arg15: memref<1x10xf32, #tpu.memory_space<vmem>>, %arg16: memref<8x10xf32, #tpu.memory_space<vmem>>) attributes {dimension_semantics = [#tpu.dimension_semantics<parallel>], iteration_bounds = array<i64: 1>, scalar_prefetch = 0 : i64, scratch_operands = 0 : i64, tpu.core_type = #tpu.core_type<tc>, window_params = [{transform_indices = @transform_0, window_bounds = array<i64: 8, 64>}, {pipeline_mode = #tpu.pipeline_mode<synchronous>, transform_indices = @transform_1, window_bounds = array<i64: 64, 128>}, {pipeline_mode = #tpu.pipeline_mode<synchronous>, transform_indices = @transform_2, window_bounds = array<i64: 1, 128>}, {pipeline_mode = #tpu.pipeline_mode<synchronous>, transform_indices = @transform_3, window_bounds = array<i64: 128, 64>}, {pipeline_mode = #tpu.pipeline_mode<synchronous>, transform_indices = @transform_4, window_bounds = array<i64: 1, 64>}, {pipeline_mode = #tpu.pipeline_mode<synchronous>, transform_indices = @transform_5, window_bounds = array<i64: 64, 10>}, {pipeline_mode = #tpu.pipeline_mode<synchronous>, transform_indices = @transform_6, window_bounds = array<i64: 1, 10>}, {pipeline_mode = #tpu.pipeline_mode<synchronous>, transform_indices = @transform_7, window_bounds = array<i64: 10, 10>}, {pipeline_mode = #tpu.pipeline_mode<synchronous>, transform_indices = @transform_8, window_bounds = array<i64: 1, 10>}, {pipeline_mode = #tpu.pipeline_mode<synchronous>, transform_indices = @transform_9, window_bounds = array<i64: 10, 10>}, {pipeline_mode = #tpu.pipeline_mode<synchronous>, transform_indices = @transform_10, window_bounds = array<i64: 1, 10>}, {pipeline_mode = #tpu.pipeline_mode<synchronous>, transform_indices = @transform_11, window_bounds = array<i64: 10, 10>}, {pipeline_mode = #tpu.pipeline_mode<synchronous>, transform_indices = @transform_12, window_bounds = array<i64: 1, 10>}, {pipeline_mode = #tpu.pipeline_mode<synchronous>, transform_indices = @transform_13, window_bounds = array<i64: 10, 10>}, {pipeline_mode = #tpu.pipeline_mode<synchronous>, transform_indices = @transform_14, window_bounds = array<i64: 1, 10>}, {transform_indices = @transform_15, window_bounds = array<i64: 8, 10>}]} {
    %c0 = arith.constant 0 : index
    %c0_0 = arith.constant 0 : index
    %0 = vector.load %arg1[%c0, %c0_0] : memref<8x64xbf16, #tpu.memory_space<vmem>>, vector<8x64xbf16>
    %c0_1 = arith.constant 0 : index
    %c0_2 = arith.constant 0 : index
    %1 = vector.load %arg2[%c0_1, %c0_2] : memref<64x128xbf16, #tpu.memory_space<vmem>>, vector<64x128xbf16>
    %cst = arith.constant dense<0.000000e+00> : vector<8x128xf32>
    %2 = tpu.matmul %0, %1, %cst {dimension_numbers = #tpu.dot_dimension_numbers<[1], [0], [0], [1], [0, 0, 1, 1], [], []>} : vector<8x64xbf16>, vector<64x128xbf16>, vector<8x128xf32> -> vector<8x128xf32>
    %c0_3 = arith.constant 0 : index
    %c0_4 = arith.constant 0 : index
    %3 = vector.load %arg3[%c0_3, %c0_4] : memref<1x128xf32, #tpu.memory_space<vmem>>, vector<1x128xf32>
    %4 = vector.broadcast %3 : vector<1x128xf32> to vector<8x128xf32>
    %5 = arith.addf %2, %4 : vector<8x128xf32>
    %cst_5 = arith.constant 5.000000e-01 : f32
    %6 = vector.broadcast %cst_5 : f32 to vector<8x128xf32>
    %7 = arith.mulf %6, %5 : vector<8x128xf32>
    %8 = math.tanh %7 : vector<8x128xf32>
    %cst_6 = arith.constant 5.000000e-01 : f32
    %9 = vector.broadcast %cst_6 : f32 to vector<8x128xf32>
    %10 = arith.mulf %9, %8 : vector<8x128xf32>
    %cst_7 = arith.constant 5.000000e-01 : f32
    %11 = vector.broadcast %cst_7 : f32 to vector<8x128xf32>
    %12 = arith.addf %10, %11 : vector<8x128xf32>
    %13 = arith.truncf %12 : vector<8x128xf32> to vector<8x128xbf16>
    %c0_8 = arith.constant 0 : index
    %c0_9 = arith.constant 0 : index
    %14 = vector.load %arg4[%c0_8, %c0_9] : memref<128x64xbf16, #tpu.memory_space<vmem>>, vector<128x64xbf16>
    %cst_10 = arith.constant dense<0.000000e+00> : vector<8x64xf32>
    %15 = tpu.matmul %13, %14, %cst_10 {dimension_numbers = #tpu.dot_dimension_numbers<[1], [0], [0], [1], [0, 0, 1, 1], [], []>} : vector<8x128xbf16>, vector<128x64xbf16>, vector<8x64xf32> -> vector<8x64xf32>
    %c0_11 = arith.constant 0 : index
    %c0_12 = arith.constant 0 : index
    %16 = vector.load %arg5[%c0_11, %c0_12] : memref<1x64xf32, #tpu.memory_space<vmem>>, vector<1x64xf32>
    %17 = vector.broadcast %16 : vector<1x64xf32> to vector<8x64xf32>
    %18 = arith.addf %15, %17 : vector<8x64xf32>
    %cst_13 = arith.constant 5.000000e-01 : f32
    %19 = vector.broadcast %cst_13 : f32 to vector<8x64xf32>
    %20 = arith.mulf %19, %18 : vector<8x64xf32>
    %21 = math.tanh %20 : vector<8x64xf32>
    %cst_14 = arith.constant 5.000000e-01 : f32
    %22 = vector.broadcast %cst_14 : f32 to vector<8x64xf32>
    %23 = arith.mulf %22, %21 : vector<8x64xf32>
    %cst_15 = arith.constant 5.000000e-01 : f32
    %24 = vector.broadcast %cst_15 : f32 to vector<8x64xf32>
    %25 = arith.addf %23, %24 : vector<8x64xf32>
    %26 = arith.truncf %25 : vector<8x64xf32> to vector<8x64xbf16>
    %c0_16 = arith.constant 0 : index
    %c0_17 = arith.constant 0 : index
    %27 = vector.load %arg6[%c0_16, %c0_17] : memref<64x10xbf16, #tpu.memory_space<vmem>>, vector<64x10xbf16>
    %cst_18 = arith.constant dense<0.000000e+00> : vector<8x10xf32>
    %28 = tpu.matmul %26, %27, %cst_18 {dimension_numbers = #tpu.dot_dimension_numbers<[1], [0], [0], [1], [0, 0, 1, 1], [], []>} : vector<8x64xbf16>, vector<64x10xbf16>, vector<8x10xf32> -> vector<8x10xf32>
    %c0_19 = arith.constant 0 : index
    %c0_20 = arith.constant 0 : index
    %29 = vector.load %arg7[%c0_19, %c0_20] : memref<1x10xf32, #tpu.memory_space<vmem>>, vector<1x10xf32>
    %30 = vector.broadcast %29 : vector<1x10xf32> to vector<8x10xf32>
    %31 = arith.addf %28, %30 : vector<8x10xf32>
    %cst_21 = arith.constant 5.000000e-01 : f32
    %32 = vector.broadcast %cst_21 : f32 to vector<8x10xf32>
    %33 = arith.mulf %32, %31 : vector<8x10xf32>
    %34 = math.tanh %33 : vector<8x10xf32>
    %cst_22 = arith.constant 5.000000e-01 : f32
    %35 = vector.broadcast %cst_22 : f32 to vector<8x10xf32>
    %36 = arith.mulf %35, %34 : vector<8x10xf32>
    %cst_23 = arith.constant 5.000000e-01 : f32
    %37 = vector.broadcast %cst_23 : f32 to vector<8x10xf32>
    %38 = arith.addf %36, %37 : vector<8x10xf32>
    %39 = arith.truncf %38 : vector<8x10xf32> to vector<8x10xbf16>
    %c0_24 = arith.constant 0 : index
    %c0_25 = arith.constant 0 : index
    %40 = vector.load %arg8[%c0_24, %c0_25] : memref<10x10xbf16, #tpu.memory_space<vmem>>, vector<10x10xbf16>
    %cst_26 = arith.constant dense<0.000000e+00> : vector<8x10xf32>
    %41 = tpu.matmul %39, %40, %cst_26 {dimension_numbers = #tpu.dot_dimension_numbers<[1], [0], [0], [1], [0, 0, 1, 1], [], []>} : vector<8x10xbf16>, vector<10x10xbf16>, vector<8x10xf32> -> vector<8x10xf32>
    %c0_27 = arith.constant 0 : index
    %c0_28 = arith.constant 0 : index
    %42 = vector.load %arg9[%c0_27, %c0_28] : memref<1x10xf32, #tpu.memory_space<vmem>>, vector<1x10xf32>
    %43 = vector.broadcast %42 : vector<1x10xf32> to vector<8x10xf32>
    %44 = arith.addf %41, %43 : vector<8x10xf32>
    %cst_29 = arith.constant 5.000000e-01 : f32
    %45 = vector.broadcast %cst_29 : f32 to vector<8x10xf32>
    %46 = arith.mulf %45, %44 : vector<8x10xf32>
    %47 = math.tanh %46 : vector<8x10xf32>
    %cst_30 = arith.constant 5.000000e-01 : f32
    %48 = vector.broadcast %cst_30 : f32 to vector<8x10xf32>
    %49 = arith.mulf %48, %47 : vector<8x10xf32>
    %cst_31 = arith.constant 5.000000e-01 : f32
    %50 = vector.broadcast %cst_31 : f32 to vector<8x10xf32>
    %51 = arith.addf %49, %50 : vector<8x10xf32>
    %52 = arith.truncf %51 : vector<8x10xf32> to vector<8x10xbf16>
    %c0_32 = arith.constant 0 : index
    %c0_33 = arith.constant 0 : index
    %53 = vector.load %arg10[%c0_32, %c0_33] : memref<10x10xbf16, #tpu.memory_space<vmem>>, vector<10x10xbf16>
    %cst_34 = arith.constant dense<0.000000e+00> : vector<8x10xf32>
    %54 = tpu.matmul %52, %53, %cst_34 {dimension_numbers = #tpu.dot_dimension_numbers<[1], [0], [0], [1], [0, 0, 1, 1], [], []>} : vector<8x10xbf16>, vector<10x10xbf16>, vector<8x10xf32> -> vector<8x10xf32>
    %c0_35 = arith.constant 0 : index
    %c0_36 = arith.constant 0 : index
    %55 = vector.load %arg11[%c0_35, %c0_36] : memref<1x10xf32, #tpu.memory_space<vmem>>, vector<1x10xf32>
    %56 = vector.broadcast %55 : vector<1x10xf32> to vector<8x10xf32>
    %57 = arith.addf %54, %56 : vector<8x10xf32>
    %cst_37 = arith.constant 5.000000e-01 : f32
    %58 = vector.broadcast %cst_37 : f32 to vector<8x10xf32>
    %59 = arith.mulf %58, %57 : vector<8x10xf32>
    %60 = math.tanh %59 : vector<8x10xf32>
    %cst_38 = arith.constant 5.000000e-01 : f32
    %61 = vector.broadcast %cst_38 : f32 to vector<8x10xf32>
    %62 = arith.mulf %61, %60 : vector<8x10xf32>
    %cst_39 = arith.constant 5.000000e-01 : f32
    %63 = vector.broadcast %cst_39 : f32 to vector<8x10xf32>
    %64 = arith.addf %62, %63 : vector<8x10xf32>
    %65 = arith.truncf %64 : vector<8x10xf32> to vector<8x10xbf16>
    %c0_40 = arith.constant 0 : index
    %c0_41 = arith.constant 0 : index
    %66 = vector.load %arg12[%c0_40, %c0_41] : memref<10x10xbf16, #tpu.memory_space<vmem>>, vector<10x10xbf16>
    %cst_42 = arith.constant dense<0.000000e+00> : vector<8x10xf32>
    %67 = tpu.matmul %65, %66, %cst_42 {dimension_numbers = #tpu.dot_dimension_numbers<[1], [0], [0], [1], [0, 0, 1, 1], [], []>} : vector<8x10xbf16>, vector<10x10xbf16>, vector<8x10xf32> -> vector<8x10xf32>
    %c0_43 = arith.constant 0 : index
    %c0_44 = arith.constant 0 : index
    %68 = vector.load %arg13[%c0_43, %c0_44] : memref<1x10xf32, #tpu.memory_space<vmem>>, vector<1x10xf32>
    %69 = vector.broadcast %68 : vector<1x10xf32> to vector<8x10xf32>
    %70 = arith.addf %67, %69 : vector<8x10xf32>
    %cst_45 = arith.constant 5.000000e-01 : f32
    %71 = vector.broadcast %cst_45 : f32 to vector<8x10xf32>
    %72 = arith.mulf %71, %70 : vector<8x10xf32>
    %73 = math.tanh %72 : vector<8x10xf32>
    %cst_46 = arith.constant 5.000000e-01 : f32
    %74 = vector.broadcast %cst_46 : f32 to vector<8x10xf32>
    %75 = arith.mulf %74, %73 : vector<8x10xf32>
    %cst_47 = arith.constant 5.000000e-01 : f32
    %76 = vector.broadcast %cst_47 : f32 to vector<8x10xf32>
    %77 = arith.addf %75, %76 : vector<8x10xf32>
    %78 = arith.truncf %77 : vector<8x10xf32> to vector<8x10xbf16>
    %c0_48 = arith.constant 0 : index
    %c0_49 = arith.constant 0 : index
    %79 = vector.load %arg14[%c0_48, %c0_49] : memref<10x10xbf16, #tpu.memory_space<vmem>>, vector<10x10xbf16>
    %cst_50 = arith.constant dense<0.000000e+00> : vector<8x10xf32>
    %80 = tpu.matmul %78, %79, %cst_50 {dimension_numbers = #tpu.dot_dimension_numbers<[1], [0], [0], [1], [0, 0, 1, 1], [], []>} : vector<8x10xbf16>, vector<10x10xbf16>, vector<8x10xf32> -> vector<8x10xf32>
    %c0_51 = arith.constant 0 : index
    %c0_52 = arith.constant 0 : index
    %81 = vector.load %arg15[%c0_51, %c0_52] : memref<1x10xf32, #tpu.memory_space<vmem>>, vector<1x10xf32>
    %82 = vector.broadcast %81 : vector<1x10xf32> to vector<8x10xf32>
    %83 = arith.addf %80, %82 : vector<8x10xf32>
    %cst_53 = arith.constant dense<0xFF800000> : vector<8xf32>
    %84 = vector.multi_reduction <maximumf>, %83, %cst_53 [1] : vector<8x10xf32> to vector<8xf32>
    %85 = vector.shape_cast %84 : vector<8xf32> to vector<8x1xf32>
    %86 = vector.broadcast %85 : vector<8x1xf32> to vector<8x10xf32>
    %87 = arith.subf %83, %86 : vector<8x10xf32>
    %88 = math.exp %87 : vector<8x10xf32>
    %cst_54 = arith.constant dense<0.000000e+00> : vector<8xf32>
    %89 = vector.multi_reduction <add>, %88, %cst_54 [1] : vector<8x10xf32> to vector<8xf32>
    %90 = vector.shape_cast %89 : vector<8xf32> to vector<8x1xf32>
    %91 = math.log %90 : vector<8x1xf32>
    %92 = vector.broadcast %91 : vector<8x1xf32> to vector<8x10xf32>
    %93 = arith.subf %87, %92 : vector<8x10xf32>
    %c0_55 = arith.constant 0 : index
    %c0_56 = arith.constant 0 : index
    %94 = vector.load %arg16[%c0_55, %c0_56] : memref<8x10xf32, #tpu.memory_space<vmem>>, vector<8x10xf32>
    tpu.vector_store %arg16[%c0_55, %c0_56], %93 {strides = array<i32>} : memref<8x10xf32, #tpu.memory_space<vmem>>, vector<8x10xf32>,
    return
  }
  func.func @transform_0(%arg0: i32) -> (i32, i32) {
    %c0_i32 = arith.constant 0 : i32
    %c0_i32_0 = arith.constant 0 : i32
    return %arg0, %c0_i32 : i32, i32
  }
  func.func @transform_1(%arg0: i32) -> (i32, i32) {
    %c0_i32 = arith.constant 0 : i32
    %c0_i32_0 = arith.constant 0 : i32
    %c0_i32_1 = arith.constant 0 : i32
    return %c0_i32, %c0_i32_0 : i32, i32
  }
  func.func @transform_2(%arg0: i32) -> (i32, i32) {
    %c0_i32 = arith.constant 0 : i32
    %c0_i32_0 = arith.constant 0 : i32
    %c0_i32_1 = arith.constant 0 : i32
    return %c0_i32, %c0_i32_0 : i32, i32
  }
  func.func @transform_3(%arg0: i32) -> (i32, i32) {
    %c0_i32 = arith.constant 0 : i32
    %c0_i32_0 = arith.constant 0 : i32
    %c0_i32_1 = arith.constant 0 : i32
    return %c0_i32, %c0_i32_0 : i32, i32
  }
  func.func @transform_4(%arg0: i32) -> (i32, i32) {
    %c0_i32 = arith.constant 0 : i32
    %c0_i32_0 = arith.constant 0 : i32
    %c0_i32_1 = arith.constant 0 : i32
    return %c0_i32, %c0_i32_0 : i32, i32
  }
  func.func @transform_5(%arg0: i32) -> (i32, i32) {
    %c0_i32 = arith.constant 0 : i32
    %c0_i32_0 = arith.constant 0 : i32
    %c0_i32_1 = arith.constant 0 : i32
    return %c0_i32, %c0_i32_0 : i32, i32
  }
  func.func @transform_6(%arg0: i32) -> (i32, i32) {
    %c0_i32 = arith.constant 0 : i32
    %c0_i32_0 = arith.constant 0 : i32
    %c0_i32_1 = arith.constant 0 : i32
    return %c0_i32, %c0_i32_0 : i32, i32
  }
  func.func @transform_7(%arg0: i32) -> (i32, i32) {
    %c0_i32 = arith.constant 0 : i32
    %c0_i32_0 = arith.constant 0 : i32
    %c0_i32_1 = arith.constant 0 : i32
    return %c0_i32, %c0_i32_0 : i32, i32
  }
  func.func @transform_8(%arg0: i32) -> (i32, i32) {
    %c0_i32 = arith.constant 0 : i32
    %c0_i32_0 = arith.constant 0 : i32
    %c0_i32_1 = arith.constant 0 : i32
    return %c0_i32, %c0_i32_0 : i32, i32
  }
  func.func @transform_9(%arg0: i32) -> (i32, i32) {
    %c0_i32 = arith.constant 0 : i32
    %c0_i32_0 = arith.constant 0 : i32
    %c0_i32_1 = arith.constant 0 : i32
    return %c0_i32, %c0_i32_0 : i32, i32
  }
  func.func @transform_10(%arg0: i32) -> (i32, i32) {
    %c0_i32 = arith.constant 0 : i32
    %c0_i32_0 = arith.constant 0 : i32
    %c0_i32_1 = arith.constant 0 : i32
    return %c0_i32, %c0_i32_0 : i32, i32
  }
  func.func @transform_11(%arg0: i32) -> (i32, i32) {
    %c0_i32 = arith.constant 0 : i32
    %c0_i32_0 = arith.constant 0 : i32
    %c0_i32_1 = arith.constant 0 : i32
    return %c0_i32, %c0_i32_0 : i32, i32
  }
  func.func @transform_12(%arg0: i32) -> (i32, i32) {
    %c0_i32 = arith.constant 0 : i32
    %c0_i32_0 = arith.constant 0 : i32
    %c0_i32_1 = arith.constant 0 : i32
    return %c0_i32, %c0_i32_0 : i32, i32
  }
  func.func @transform_13(%arg0: i32) -> (i32, i32) {
    %c0_i32 = arith.constant 0 : i32
    %c0_i32_0 = arith.constant 0 : i32
    %c0_i32_1 = arith.constant 0 : i32
    return %c0_i32, %c0_i32_0 : i32, i32
  }
  func.func @transform_14(%arg0: i32) -> (i32, i32) {
    %c0_i32 = arith.constant 0 : i32
    %c0_i32_0 = arith.constant 0 : i32
    %c0_i32_1 = arith.constant 0 : i32
    return %c0_i32, %c0_i32_0 : i32, i32
  }
  func.func @transform_15(%arg0: i32) -> (i32, i32) {
    %c0_i32 = arith.constant 0 : i32
    %c0_i32_0 = arith.constant 0 : i32
    return %arg0, %c0_i32 : i32, i32
  }
}

</mosaic_0001>

<bundles_post_ra>
// kernel: tpu_custom_call.1
= control target key start
LH: loop header
LB: loop body
LE: loop exit
PB: predicated region body
PF: predicated region fallthrough
CT: control target
= control target key end

     0   :  { %v819_v1 = vmov 0.0   ;;  %vm820_vm0 = vmmov 0   ;;  %vm92_vm1 = vcmask 523264   ;;  %s1045_s0 = inlined_call_operand.vmem [shape: bf16[8,64], index: 0, kind: input, shape index: {}]   ;;  %s1046_s1 = inlined_call_operand.vmem [shape: bf16[64,128], index: 1, kind: input, shape index: {}]   ;;  %s1047_s2 = inlined_call_operand.vmem [shape: f32[1,128], index: 2, kind: input, shape index: {}]   ;;  %s1048_s3 = inlined_call_operand.vmem [shape: bf16[128,64], index: 3, kind: input, shape index: {}]   ;;  %s1049_s4 = inlined_call_operand.vmem [shape: f32[1,64], index: 4, kind: input, shape index: {}]   ;;  %s1050_s5 = inlined_call_operand.vmem [shape: bf16[64,10], index: 5, kind: input, shape index: {}]   ;;  %s1051_s6 = inlined_call_operand.vmem [shape: f32[1,10], index: 6, kind: input, shape index: {}]   ;;  %s1052_s7 = inlined_call_operand.vmem [shape: bf16[10,10], index: 7, kind: input, shape index: {}]   ;;  %s1053_s8 = inlined_call_operand.vmem [shape: f32[1,10], index: 8, kind: input, shape index: {}]   ;;  %s1054_s9 = inlined_call_operand.vmem [shape: bf16[10,10], index: 9, kind: input, shape index: {}]   ;;  %s1055_s10 = inlined_call_operand.vmem [shape: f32[1,10], index: 10, kind: input, shape index: {}]   ;;  %s1056_s11 = inlined_call_operand.vmem [shape: bf16[10,10], index: 11, kind: input, shape index: {}]   ;;  %s1057_s12 = inlined_call_operand.vmem [shape: f32[1,10], index: 12, kind: input, shape index: {}]   ;;  %s1058_s13 = inlined_call_operand.vmem [shape: bf16[10,10], index: 13, kind: input, shape index: {}]   ;;  %s1059_s14 = inlined_call_operand.vmem [shape: f32[1,10], index: 14, kind: input, shape index: {}]   ;;  %s1060_s15 = inlined_call_operand.hbm [shape: f32[8,10], index: 15, kind: output, shape index: {}]  }
   0x1   :  { %v759_v0 = vld [vmem:[%s1046_s1] sm:$0xff]   ;;  %688 = vmatprep.subr.bf16.mxu0 %v819_v1  ;;  %700 = vmatprep.subr.bf16.mxu1 %v819_v1  ;;  %v760_v2 = vld [vmem:[%s1046_s1 + $0x8] sm:$0xff]   ;;  %v761_v4 = vld [vmem:[%s1046_s1 + $0x10] sm:$0xff]  }
   0x2   :  { %689 = vmatpush3.bf16.msra.mxu0 %v759_v0  ;;  %696 = vmatprep.mubr.msk.bf16.mxu0 %vm820_vm0, %v819_v1  ;;  %v763_v3 = vld [vmem:[%s1048_s3] sm:$0xff]   ;;  %v764_v5 = vld [vmem:[%s1048_s3 + $0x8] sm:$0xff]   ;;  %v762_v6 = vld [vmem:[%s1046_s1 + $0x18] sm:$0xff]  }
   0x3   :  { %690 = vmatprep.subr.bf16.mxu0 %v819_v1  ;;  %716 = vmatprep.mubr.msk.bf16.mxu1 %vm820_vm0, %v819_v1  ;;  %v765_v7 = vld [vmem:[%s1048_s3 + $0x10] sm:$0xff]   ;;  %v52_v8 = vld [vmem:[%s1045_s0] sm:$0xf] }
   0x4   :  { %701 = vmatpush3.bf16.msra.mxu1 %v763_v3 }
   0x5   :  { %702 = vmatprep.subr.bf16.mxu1 %v819_v1 }
   0x6   :  { %691 = vmatpush3.bf16.msra.mxu0 %v760_v2 }
   0x7   :  { %692 = vmatprep.subr.bf16.mxu0 %v819_v1 }
   0x8   :  { %703 = vmatpush3.bf16.msra.mxu1 %v764_v5 }
   0x9   :  { %704 = vmatprep.subr.bf16.mxu1 %v819_v1 }
   0xa   :  { %693 = vmatpush3.bf16.msra.mxu0 %v761_v4 }
   0xb   :  { %694 = vmatprep.subr.bf16.mxu0 %v819_v1 }
   0xc   :  { %705 = vmatpush3.bf16.msra.mxu1 %v765_v7 }
   0xd   :  { %706 = vmatprep.subr.bf16.mxu1 %v819_v1 }
   0xe   :  { %695 = vmatpush3.bf16.msra.mxu0 %v762_v6 }
   0xf   :  { %720 = vmatprep.subr.bf16.mxu0 %v819_v1 }
  0x10   :  { %20 = vsyncpa [#allocation3], 0  ;;  %v766_v9 = vld [vmem:[%s1048_s3 + $0x18] sm:$0xff]   ;;  %v767_v10 = vld [vmem:[%s1048_s3 + $0x20] sm:$0xff]   ;;  %vm362_vm2 = vcmask 1044480   ;;  %vm358_vm3 = vcmask 80896  }
  0x11   :  { %697 = vmatmul.mubr.msk.bf16.vlgmr.msra.gmra.mrb[0].mxu0 %vm92_vm1, %v52_v8  ;;  %707 = vmatpush3.bf16.msra.mxu1 %v766_v9  ;;  %v768_v11 = vld [vmem:[%s1048_s3 + $0x28] sm:$0xff]   ;;  %v769_v12 = vld [vmem:[%s1048_s3 + $0x30] sm:$0xff]   ;;  %v770_v13 = vld [vmem:[%s1048_s3 + $0x38] sm:$0xff]  }
  0x12   :  { %728 = vmatprep.mubr.msk.bf16.mxu0 %vm820_vm0, %v819_v1  ;;  %708 = vmatprep.subr.bf16.mxu1 %v819_v1  ;;  %v628_v14 = vld [vmem:[%s1047_s2] ss:$0 sm:$0xff]  ;;  %v772_v26 = vld [vmem:[%s1050_s5 + $0x8] sm:$0xff]   ;;  %v773_v27 = vld [vmem:[%s1050_s5 + $0x10] sm:$0xff]  }
  0x13   :  { %v771_v25 = vld [vmem:[%s1050_s5] sm:$0xff]   ;;  %v774_v28 = vld [vmem:[%s1050_s5 + $0x18] sm:$0xff]  }
  0x14   :  { %721 = vmatpush3.bf16.msra.mxu0 %v771_v25  ;;  %v634_v29 = vld [vmem:[%s1049_s4] ss:$0 sm:$0xff] }
  0x15   :  { %709 = vmatpush3.bf16.msra.mxu1 %v767_v10  ;;  %722 = vmatprep.subr.bf16.mxu0 %v819_v1  ;;  %v775_v40 = vld [vmem:[%s1052_s7] sm:$0x1f]  }
  0x16   :  { %710 = vmatprep.subr.bf16.mxu1 %v819_v1  ;;  %v364_v41 = vsel %vm362_vm2, %v775_v40, 0  ;;  %v643_v42 = vld [vmem:[%s1051_s6] ss:$0 sm:$0xff] }
  0x17   :  { %v776_v53 = vld [vmem:[%s1054_s9] sm:$0x1f]  }
  0x18   :  { %723 = vmatpush3.bf16.msra.mxu0 %v772_v26  ;;  %v429_v54 = vsel %vm362_vm2, %v776_v53, 0  ;;  %v649_v55 = vld [vmem:[%s1053_s8] ss:$0 sm:$0xff] }
  0x19   :  { %711 = vmatpush3.bf16.msra.mxu1 %v768_v11  ;;  %724 = vmatprep.subr.bf16.mxu0 %v819_v1  ;;  %v777_v3 = vld [vmem:[%s1056_s11] sm:$0x1f]  }
  0x1a   :  { %712 = vmatprep.subr.bf16.mxu1 %v819_v1  ;;  %v494_v4 = vsel %vm362_vm2, %v777_v3, 0  ;;  %v652_v5 = vld [vmem:[%s1055_s10] ss:$0 sm:$0xff] }
  0x1c   :  { %725 = vmatpush3.bf16.msra.mxu0 %v773_v27 }
  0x1d   :  { %713 = vmatpush3.bf16.msra.mxu1 %v769_v12  ;;  %726 = vmatprep.subr.bf16.mxu0 %v819_v1 }
  0x1e   :  { %714 = vmatprep.subr.bf16.mxu1 %v819_v1 }
  0x20   :  { %727 = vmatpush3.bf16.msra.mxu0 %v774_v28  ;;  %v658_v28 = vld [vmem:[%s1059_s14] ss:$0 sm:$0xff] }
  0x21   :  { %715 = vmatpush3.bf16.msra.mxu1 %v770_v13  ;;  %732 = vmatprep.subr.bf16.mxu0 %v819_v1 }
  0x22   :  { %738 = vmatprep.subr.bf16.mxu1 %v819_v1 }
  0xe4   :  { %v130_v15 = vpop.f32.mrb[0].mxu0 }
  0xe5   :  { %v131_v16 = vadd.f32 %v628_v14, %v130_v15  ;;  %v698_v17 = vpop.f32.mrb[1].mxu0  ;;  %v778_v15 = vld [vmem:[%s1058_s13] sm:$0x1f]  }
  0xe6   :  { %v133_v18 = vpop.f32.mrb[2].mxu0  ;;  %v655_v17 = vld [vmem:[%s1057_s12] ss:$0 sm:$0xff]  ;;  %s821_s12 = smov [#allocation2]  }
  0xe7   :  { %v136_v19 = vmul.f32 0.5, %v131_v16  ;;  %v699_v20 = vpop.f32.mrb[3].mxu0  ;;  %v559_v16 = vsel %vm362_vm2, %v778_v15, 0  ;;  %s620_s14 = sshll.u32 %s821_s12, 4  ;;  %s621_s14 = int_to_ptr.vmem [resolvable:$true] %s620_s14 }
  0xe8   :  { %s795_s3 = scalar_lea.vmem %s621_s14, 128  ;;  %p800_p1 = scmp.lt.s32.totalorder %s621_s14, %s621_s14 }
  0xe9   :  { %779 = vtanh.f32 %v136_v19  ;;  %p796_p0 = scmp.ne.s32.totalorder %s621_s14, %s795_s3  ;;  %p801_p2 = scmp.lt.s32.totalorder %s795_s3, %s795_s3 }
  0xeb   :  { %p802_p3 = por %p801_p2, %p800_p1 }
  0xed   :  { %p803_p4 = pnand %p802_p3, %p796_p0 }
  0xf3   :  { %v780_v21 = vpop.eup %779 }
  0xf4   :  { %v138_v22 = vmul.f32 0.5, %v780_v21 }
  0xf6   :  { %v139_v23 = vadd.f32 0.5, %v138_v22 }
  0xf8   :  { %v140_v24 = vpack.c.bf16 %v139_v23, %v139_v23 }
  0xfa   :  { %717 = vmatmul.mubr.bf16.vlgmr.msra.gmra.mrb[0].mxu1 %v140_v24 }
  0xfb   :  { %740 = vmatprep.mubr.msk.bf16.mxu1 %vm820_vm0, %v819_v1  ;;  %739 = vmatpush3.bf16.msra.mxu1 %v429_v54 }
  0xfc   :  { %750 = vmatprep.subr.bf16.mxu1 %v819_v1 }
 0x1cd   :  { %v246_v30 = vpop.f32.mrb[0].mxu1 }
 0x1ce   :  { %v247_v31 = vadd.f32 %v634_v29, %v246_v30  ;;  %v718_v32 = vpop.f32.mrb[1].mxu1 }
 0x1cf   :  { %v249_v33 = vpop.f32.mrb[2].mxu1 }
 0x1d0   :  { %v252_v34 = vmul.f32 0.5, %v247_v31  ;;  %v719_v35 = vpop.f32.mrb[3].mxu1 }
 0x1d2   :  { %781 = vtanh.f32 %v252_v34 }
 0x1dc   :  { %v782_v36 = vpop.eup %781 }
 0x1dd   :  { %v254_v37 = vmul.f32 0.5, %v782_v36 }
 0x1df   :  { %v255_v38 = vadd.f32 0.5, %v254_v37 }
 0x1e1   :  { %v256_v39 = vpack.c.bf16 %v255_v38, %v255_v38 }
 0x1e3   :  { %729 = vmatmul.mubr.msk.bf16.vlgmr.msra.gmra.mrb[4].mxu0 %vm92_vm1, %v256_v39 }
 0x1e4   :  { %734 = vmatprep.mubr.msk.bf16.mxu0 %vm820_vm0, %v819_v1  ;;  %733 = vmatpush3.bf16.msra.mxu0 %v364_v41 }
 0x1e5   :  { %744 = vmatprep.subr.bf16.mxu0 %v819_v1 }
 0x2b6   :  { %v333_v43 = vpop.f32.mrb[4].mxu0 }
 0x2b7   :  { %v334_v44 = vadd.f32 %v643_v42, %v333_v43  ;;  %v730_v45 = vpop.f32.mrb[5].mxu0 }
 0x2b8   :  { %v336_v46 = vpop.f32.mrb[6].mxu0 }
 0x2b9   :  { %v339_v47 = vmul.f32 0.5, %v334_v44  ;;  %v731_v48 = vpop.f32.mrb[7].mxu0 }
 0x2bb   :  { %783 = vtanh.f32 %v339_v47 }
 0x2c5   :  { %v784_v49 = vpop.eup %783 }
 0x2c6   :  { %v341_v50 = vmul.f32 0.5, %v784_v49 }
 0x2c8   :  { %v342_v51 = vadd.f32 0.5, %v341_v50 }
 0x2ca   :  { %v343_v52 = vpack.c.bf16 %v342_v51, %v342_v51 }
 0x2cc   :  { %735 = vmatmul.mubr.msk.bf16.vlgmr.msra.gmra.mrb[8].mxu0 %vm358_vm3, %v343_v52 }
 0x2cd   :  { %746 = vmatprep.mubr.msk.bf16.mxu0 %vm820_vm0, %v819_v1  ;;  %745 = vmatpush3.bf16.msra.mxu0 %v494_v4 }
 0x39f   :  { %v400_v56 = vpop.f32.mrb[8].mxu0 }
 0x3a0   :  { %v401_v57 = vadd.f32 %v649_v55, %v400_v56  ;;  %v736_v58 = vpop.f32.mrb[9].mxu0 }
 0x3a1   :  { %v403_v59 = vpop.f32.mrb[10].mxu0 }
 0x3a2   :  { %v406_v60 = vmul.f32 0.5, %v401_v57  ;;  %v737_v61 = vpop.f32.mrb[11].mxu0 }
 0x3a4   :  { %785 = vtanh.f32 %v406_v60 }
 0x3ae   :  { %v786_v62 = vpop.eup %785 }
 0x3af   :  { %v408_v63 = vmul.f32 0.5, %v786_v62 }
 0x3b1   :  { %v409_v0 = vadd.f32 0.5, %v408_v63 }
 0x3b3   :  { %v410_v2 = vpack.c.bf16 %v409_v0, %v409_v0 }
 0x3b5   :  { %741 = vmatmul.mubr.msk.bf16.vlgmr.msra.gmra.mrb[4].mxu1 %vm358_vm3, %v410_v2 }
 0x3b6   :  { %752 = vmatprep.mubr.msk.bf16.mxu1 %vm820_vm0, %v819_v1  ;;  %751 = vmatpush3.bf16.msra.mxu1 %v559_v16 }
 0x488   :  { %v465_v6 = vpop.f32.mrb[4].mxu1 }
 0x489   :  { %v466_v7 = vadd.f32 %v652_v5, %v465_v6  ;;  %v742_v8 = vpop.f32.mrb[5].mxu1 }
 0x48a   :  { %v468_v9 = vpop.f32.mrb[6].mxu1 }
 0x48b   :  { %v471_v10 = vmul.f32 0.5, %v466_v7  ;;  %v743_v11 = vpop.f32.mrb[7].mxu1 }
 0x48d   :  { %787 = vtanh.f32 %v471_v10 }
 0x497   :  { %v788_v12 = vpop.eup %787 }
 0x498   :  { %v473_v1 = vmul.f32 0.5, %v788_v12 }
 0x49a   :  { %v474_v13 = vadd.f32 0.5, %v473_v1 }
 0x49c   :  { %v475_v14 = vpack.c.bf16 %v474_v13, %v474_v13 }
 0x49e   :  { %747 = vmatmul.mubr.msk.bf16.vlgmr.msra.gmra.mrb[12].mxu0 %vm358_vm3, %v475_v14 }
 0x571   :  { %v530_v18 = vpop.f32.mrb[12].mxu0 }
 0x572   :  { %v531_v19 = vadd.f32 %v655_v17, %v530_v18  ;;  %v748_v20 = vpop.f32.mrb[13].mxu0 }
 0x573   :  { %v533_v21 = vpop.f32.mrb[14].mxu0 }
 0x574   :  { %v536_v22 = vmul.f32 0.5, %v531_v19  ;;  %v749_v23 = vpop.f32.mrb[15].mxu0 }
 0x576   :  { %789 = vtanh.f32 %v536_v22 }
 0x580   :  { %v790_v24 = vpop.eup %789 }
 0x581   :  { %v538_v25 = vmul.f32 0.5, %v790_v24 }
 0x583   :  { %v539_v26 = vadd.f32 0.5, %v538_v25 }
 0x585   :  { %v540_v27 = vpack.c.bf16 %v539_v26, %v539_v26 }
 0x587   :  { %753 = vmatmul.mubr.msk.bf16.vlgmr.msra.gmra.mrb[8].mxu1 %vm358_vm3, %v540_v27 }
 0x65a   :  { %v595_v29 = vpop.f32.mrb[8].mxu1 }
 0x65b   :  { %v596_v30 = vadd.f32 %v658_v28, %v595_v29  ;;  %v754_v31 = vpop.f32.mrb[9].mxu1 }
 0x65c   :  { %v598_v32 = vpop.f32.mrb[10].mxu1 }
 0x65d   :  { %v755_v33 = vpop.f32.mrb[11].mxu1  ;;  %v601_v34 = vsel %vm358_vm3, %v596_v30, -inf }
 0x65e   :  { %602 = vmax.xlane.f32.xlu0 %v601_v34 }
 0x6eb   :  { %v603_v35 = vpop.xlane.xlu0 %602 }
 0x6ec   :  { %v604_v36 = vsub.f32 %v596_v30, %v603_v35 }
 0x6ee   :  { %v605_v37 = vmul.f32 1.442695, %v604_v36 }
 0x6f0   :  { %791 = vpow2.f32 %v605_v37 }
 0x6fa   :  { %v792_v38 = vpop.eup %791 }
 0x6fb   :  { %v607_v39 = vsel %vm358_vm3, %v792_v38, 0.0 }
 0x6fc   :  { %608 = vadd.xlane.f32.xlu0 %v607_v39 }
 0x789   :  { %v609_v40 = vpop.xlane.xlu0 %608 }
 0x78a   :  { %793 = vlog2.f32 %v609_v40 }
 0x794   :  { %v794_v41 = vpop.eup %793 }
 0x795   :  { %v611_v42 = vmul.f32 0.6931472, %v794_v41 }
 0x797   :  { %v612_v43 = vsub.f32 %v604_v36, %v611_v42 }
 0x799   :  { %613 = vst.msk [vmem:[#allocation2] sm:$0xff] %vm358_vm3, %v612_v43 }
 0x79a   :  { %806 = shalt.err (!%p803_p4)
}
 0x79b   :  { %s807_s30 = scalar_lea.hbm %s1060_s15, 128 }
 0x79c   :  { %p808_p5 = scmp.ne.s32.totalorder %s1060_s15, %s807_s30  ;;  %p811_p6 = scmp.lt.u32.totalorder %s807_s30, %s1060_s15 }
 0x79e   :  { %p813_p7 = pnand %p811_p6, %p808_p5 }
 0x7a0   :  { %816 = shalt.err (!%p813_p7)
}
 0x7a1   :  { %623 = dma.vmem_to_hbm [thread:$0]  %s621_s14, 128, %s1060_s15, [#allocation3]  }
 0x7a2   :  { %817 = dma.done.wait [#allocation3], 128  }
 0x7a3   :  { %818 = vsyncadd [#allocation3], 4294967168 }
 0x7a4   :  { %627 = vsyncpa [#allocation3], 1 }

</bundles_post_ra>
